<compile_context>
chip_gen: v6e
topology: v6e:2x2x1
jax: 0.10.0
libtpu: 0.0.40
codegen_flags: <defaults>
</compile_context>

<pallas_src>
import functools
import numpy as np

import jax
import jax.numpy as jnp
from jax.experimental import pallas as pl
from jax.experimental.pallas import tpu as pltpu

_TWO_PI = float(2.0 * np.pi)
_LOG_10 = float(np.log(10.0))
_HEADS_PAD = 128  # lane-dense heads slab width


# ----------------------------------------------------------------------------
# In-kernel nonlinearities (tanh / exp / log only -> EUP-friendly, known to lower)
# ----------------------------------------------------------------------------

def _sigmoid(x):
    return 0.5 * (jnp.tanh(0.5 * x) + 1.0)


def _modified_sigmoid(x):
    # 2 * sigmoid(x) ** log(10) + 1e-7, pow written as exp(log * c).
    s = _sigmoid(x)
    return 2.0 * jnp.exp(_LOG_10 * jnp.log(s)) + 1e-7


# ----------------------------------------------------------------------------
# Pallas kernel 1: fused encoder + decoder MLP + head nonlinearities
# ----------------------------------------------------------------------------

def _mlp_kernel(x_ref, p_ref, l_ref,
                w_enc_ref, b_enc_ref,
                w1z_ref, w1p_ref, w1l_ref, b1_ref,
                wh_ref, bh_ref, o_ref, *,
                n_harmonics, sampling_rate):
    """heads = tanh(tanh(x@We+be)@W1z + p*W1p + l*W1l + b1) @ Wh + bh, then the
    per-column head nonlinearities are applied in place (lane-index selects).

    Output column layout (lane-dense, 128 wide):
      [0 : H)                harmo_freqs  = sigmoid(head) * sampling_rate (Hz)
      [H : 2H)               harmo_amps   = modified_sigmoid(head)
      [2H]                   total_amp    = modified_sigmoid(head)
      [2H+1 : 2H+1+n_bands)  noise_filter = modified_sigmoid(head - 5)
      rest                   padding (ignored)
    """
    H = n_harmonics
    z = jnp.tanh(jnp.dot(x_ref[...], w_enc_ref[...],
                         preferred_element_type=jnp.float32) + b_enc_ref[...])
    h = jnp.dot(z, w1z_ref[...], preferred_element_type=jnp.float32)
    # pitch / loudness conditioning as rank-1 broadcasts (avoids a K=2 matmul).
    h = jnp.tanh(h + p_ref[...] * w1p_ref[...] + l_ref[...] * w1l_ref[...]
                 + b1_ref[...])
    heads = jnp.dot(h, wh_ref[...], preferred_element_type=jnp.float32) + bh_ref[...]

    # Full-width EUP passes + lane-mask selects (no sub-128 lane slicing here).
    col = jax.lax.broadcasted_iota(jnp.int32, heads.shape, 1)
    freqs = _sigmoid(heads) * float(sampling_rate)
    msig = _modified_sigmoid(heads)
    msig_noise = _modified_sigmoid(heads - 5.0)
    o_ref[...] = jnp.where(col < H, freqs,
                           jnp.where(col <= 2 * H, msig, msig_noise))


def fused_mlp(frames, pitch_col, loud_col, params, *, n_harmonics, sampling_rate,
              tile_m=256):
    """frames: (M, block_size); pitch_col/loud_col: (M, 1).  Returns (M, 128)."""
    M, bs_in = frames.shape
    pad = params["w_heads"].shape[1]
    tm = M if M <= tile_m else tile_m
    assert M % tm == 0 and tm % 8 == 0, (M, tm)

    row = lambda i: (i, 0)
    full = lambda i: (0, 0)
    in_specs = [
        pl.BlockSpec((tm, bs_in), row),            # frames
        pl.BlockSpec((tm, 1), row),                # pitch
        pl.BlockSpec((tm, 1), row),                # loudness
        pl.BlockSpec(params["w_enc"].shape, full),
        pl.BlockSpec((1, pad), full),
        pl.BlockSpec(params["w1z"].shape, full),
        pl.BlockSpec((1, pad), full),
        pl.BlockSpec((1, pad), full),
        pl.BlockSpec((1, pad), full),
        pl.BlockSpec(params["w_heads"].shape, full),
        pl.BlockSpec((1, pad), full),
    ]
    return pl.pallas_call(
        functools.partial(_mlp_kernel, n_harmonics=int(n_harmonics),
                          sampling_rate=float(sampling_rate)),
        out_shape=jax.ShapeDtypeStruct((M, pad), jnp.float32),
        grid=(M // tm,),
        in_specs=in_specs,
        out_specs=pl.BlockSpec((tm, pad), row),
        compiler_params=pltpu.CompilerParams(dimension_semantics=("parallel",)),
    )(frames, pitch_col, loud_col,
      params["w_enc"], params["b_enc"],
      params["w1z"], params["w1p"], params["w1l"], params["b1"],
      params["w_heads"], params["b_heads"])


# ----------------------------------------------------------------------------
# Pallas kernel 2: additive synth (amp processing + upsample + sin) fully fused
# ----------------------------------------------------------------------------

def _synth_kernel(slab_ref, o_ref, *, sampling_rate, block_size, n_harmonics):
    """One grid step per batch.  slab_ref: (F, 128) processed heads slab,
    o_ref: (F, block_size) audio (frame-major, sample-minor)."""
    H = int(n_harmonics)
    bs = int(block_size)
    F = slab_ref.shape[0]
    nyq = sampling_rate / 2.0

    slab = slab_ref[...]                                   # (F, 128)
    f = slab[:, 0:H]                                       # (F, H)  Hz
    a = slab[:, H:2 * H]                                   # (F, H)
    tot = slab[:, 2 * H:2 * H + 1]                         # (F, 1)

    # --- frame-rate amp processing, single full-block pass --------------------
    a = a * ((f < nyq).astype(jnp.float32) + 1e-4)          # remove_outside_HB
    a = a * pl.reciprocal(jnp.sum(a, axis=-1, keepdims=True), approx=True)
    a = a * tot                                             # (F, H)

    # --- frame-rate phase bookkeeping -----------------------------------------
    w = f * (_TWO_PI / sampling_rate)                       # rad / sample, <= 2*pi
    incr = w * float(bs)
    incr = incr - _TWO_PI * jnp.floor(incr * (1.0 / _TWO_PI))   # mod 2*pi
    # exclusive cumsum over frames via strictly-lower-triangular matmul (tiny MXU op)
    rr = jax.lax.broadcasted_iota(jnp.int32, (F, F), 0)
    cc = jax.lax.broadcasted_iota(jnp.int32, (F, F), 1)
    lower = (cc < rr).astype(jnp.float32)                   # (F, F)
    carry = jnp.dot(lower, incr, preferred_element_type=jnp.float32)    # (F, H)
    carry = carry - _TWO_PI * jnp.floor(carry * (1.0 / _TWO_PI))

    # --- expand frame-rate (F, H) values to per-sample (F, H*bs) --------------
    # one-hot expansion matrix: column c belongs to harmonic c // bs
    hh = jax.lax.broadcasted_iota(jnp.int32, (H, H * bs), 0)
    tt = jax.lax.broadcasted_iota(jnp.int32, (H, H * bs), 1)
    expand = ((tt >= hh * bs) & (tt < (hh + 1) * bs)).astype(jnp.float32)
    w_x = jnp.dot(w, expand, preferred_element_type=jnp.float32)        # (F, H*bs)
    c_x = jnp.dot(carry, expand, preferred_element_type=jnp.float32)
    a_x = jnp.dot(a, expand, preferred_element_type=jnp.float32)

    # 1-based sample index within each bs-wide lane block (float-only arithmetic).
    tf = jax.lax.broadcasted_iota(jnp.int32, (F, H * bs), 1).astype(jnp.float32)
    blk = jnp.floor((tf + 0.5) * (1.0 / bs))
    i1 = tf - blk * float(bs) + 1.0

    # --- one fused phase / range-reduce / sin / amp pass over the whole tile ---
    phase = c_x + w_x * i1
    phase = phase - _TWO_PI * jnp.floor(phase * (1.0 / _TWO_PI))        # mod 2*pi
    terms = jnp.sin(phase) * a_x                                         # (F, H*bs)

    # --- reduce over harmonics: H lane-aligned (F, bs) blocks, pure VPU adds ---
    sig = terms[:, 0:bs]
    for h in range(1, H):                       # H is a small fixed hyperparameter
        sig = sig + terms[:, h * bs:(h + 1) * bs]
    o_ref[...] = sig                            # single lane-dense (F, bs) store


def additive_synth(synth_slab, *, sampling_rate, block_size, n_harmonics):
    """synth_slab: (B, F, 128) processed heads.  Returns (B, F, block_size)."""
    B, F, pad = synth_slab.shape
    bs = int(block_size)
    H = int(n_harmonics)
    T = F * bs
    cost = pl.CostEstimate(
        flops=int(B * T * H * (8 + 6 * H)),
        transcendentals=int(B * T * H),
        bytes_accessed=int(4 * (B * F * pad + B * T)),
    )
    # TODO(synk): very long signals need a time-grid axis with a carried phase
    # scratch; the frame axis then has to be re-tiled to stay (8,128)-legal.
    return pl.pallas_call(
        functools.partial(_synth_kernel, sampling_rate=float(sampling_rate),
                          block_size=bs, n_harmonics=H),
        out_shape=jax.ShapeDtypeStruct((B, F, bs), jnp.float32),
        grid=(B,),
        in_specs=[pl.BlockSpec((pl.Squeezed(), F, pad), lambda b: (b, 0, 0))],
        out_specs=pl.BlockSpec((pl.Squeezed(), F, bs), lambda b: (b, 0, 0)),
        compiler_params=pltpu.CompilerParams(dimension_semantics=("parallel",)),
        cost_estimate=cost,
    )(synth_slab)


# ----------------------------------------------------------------------------
# Plain-JAX glue (FFT-based noise filtering)
# ----------------------------------------------------------------------------

def amp_to_impulse_response(amp, target_size):
    """amp: (B, F, n_bands) real magnitudes -> time-domain IR padded to target_size."""
    ir = jnp.fft.irfft(amp.astype(jnp.complex64), axis=-1)       # (..., 2*(n_bands-1))
    filter_size = ir.shape[-1]
    ir = jnp.roll(ir, filter_size // 2, axis=-1)
    n = jnp.arange(filter_size, dtype=jnp.float32)
    win = 0.5 * (1.0 - jnp.cos(2.0 * np.pi * n / filter_size))   # periodic hann
    ir = ir * win
    ir = jnp.pad(ir, [(0, 0), (0, 0), (0, int(target_size) - filter_size)])
    ir = jnp.roll(ir, -(filter_size // 2), axis=-1)
    return ir


def fft_convolve(signal, kernel):
    """signal, kernel: (B, F, S).  Standard DDSP FFT (circular) convolution."""
    S = signal.shape[-1]
    signal = jnp.pad(signal, [(0, 0), (0, 0), (0, S)])
    kernel = jnp.pad(kernel, [(0, 0), (0, 0), (S, 0)])
    out = jnp.fft.irfft(jnp.fft.rfft(signal) * jnp.fft.rfft(kernel))
    return out[..., out.shape[-1] // 2:]


# ----------------------------------------------------------------------------
# Encoder / Decoder stand-in parameters (128-padded, deterministic)
# ----------------------------------------------------------------------------

def init_params(key, *, block_size, z_dim, hidden, n_harmonics, n_bands,
                pad=_HEADS_PAD):
    assert z_dim <= pad and hidden <= pad
    n_heads = 2 * n_harmonics + 1 + n_bands
    assert n_heads <= pad
    ks = jax.random.split(key, 5)

    def w(k, rows, cols, r_tot, c_tot, scale=0.1):
        m = jnp.zeros((r_tot, c_tot), jnp.float32)
        return m.at[:rows, :cols].set(
            jax.random.normal(k, (rows, cols), jnp.float32) * scale)

    return {
        # encoder: block_size -> z_dim (zero-padded to 128 lanes)
        "w_enc": w(ks[0], block_size, z_dim, block_size, pad),
        "b_enc": jnp.zeros((1, pad), jnp.float32),
        # hidden: z -> hidden with pitch/loudness rank-1 conditioning
        "w1z": w(ks[1], z_dim, hidden, pad, pad),
        "w1p": w(ks[2], 1, hidden, 1, pad),
        "w1l": w(ks[3], 1, hidden, 1, pad),
        "b1": jnp.zeros((1, pad), jnp.float32),
        # heads: hidden -> [freqs(H) | amps(H) | total(1) | noise(n_bands)] + pad
        "w_heads": w(ks[4], hidden, n_heads, pad, pad),
        "b_heads": jnp.zeros((1, pad), jnp.float32),
    }


# ----------------------------------------------------------------------------
# DDSPNonHarmonic.forward
# ----------------------------------------------------------------------------

def ddsp_nonharmonic_forward(params, signal, pitch, loudness, *, n_harmonics,
                             n_bands, sampling_rate, block_size, noise_key):
    B, T, _ = signal.shape
    bs = int(block_size)
    F = T // bs
    H = int(n_harmonics)
    M = B * F

    # Encoder + decoder MLPs + head nonlinearities: one fused Pallas call.
    frames = signal.reshape(M, bs)
    pitch_col = (pitch / (sampling_rate / 2.0)).reshape(M, 1).astype(jnp.float32)
    loud_col = loudness.reshape(M, 1).astype(jnp.float32)
    heads = fused_mlp(frames, pitch_col, loud_col, params,
                      n_harmonics=H, sampling_rate=sampling_rate)      # (M, 128)

    # Harmonic branch: mask + normalize + *total_amp + nearest-upsample + synth,
    # all inside one Pallas kernel on the frame-rate heads slab.
    synth_slab = heads.reshape(B, F, heads.shape[-1])
    harmonic = additive_synth(synth_slab, sampling_rate=sampling_rate,
                              block_size=bs, n_harmonics=H)            # (B, F, bs)
    harmonic = harmonic.reshape(B, T, 1)

    # Noise branch (FFT filtering stays in plain JAX).
    noise_param = heads[:, 2 * H + 1:2 * H + 1 + n_bands].reshape(B, F, n_bands)
    impulse = amp_to_impulse_response(noise_param, bs)                 # (B, F, bs)
    noise = jax.random.uniform(noise_key, (B, F, bs), jnp.float32) * 2.0 - 1.0
    noise = fft_convolve(noise, impulse).reshape(B, T, 1)

    return harmonic + noise


# ----------------------------------------------------------------------------
# main
# ----------------------------------------------------------------------------

if __name__ == "__main__":
    B = 2
    hidden_size = 32
    z_dim = 16
    n_harmonics = 8
    n_bands = 16
    sampling_rate = 16000
    block_size = 128
    F = 4
    T = F * block_size  # 512

    key = jax.random.PRNGKey(0)
    k_sig, k_pitch, k_loud, k_noise = jax.random.split(key, 4)
    signal = jax.random.normal(k_sig, (B, T, 1), jnp.float32)
    pitch = jax.random.uniform(k_pitch, (B, F, 1), jnp.float32, 50.0, 500.0)
    loudness = jax.random.normal(k_loud, (B, F, 1), jnp.float32)

    params = init_params(jax.random.PRNGKey(1), block_size=block_size,
                         z_dim=z_dim, hidden=hidden_size,
                         n_harmonics=n_harmonics, n_bands=n_bands)

    out = ddsp_nonharmonic_forward(
        params, signal, pitch, loudness,
        n_harmonics=n_harmonics, n_bands=n_bands,
        sampling_rate=sampling_rate, block_size=block_size,
        noise_key=k_noise)
    out = jax.block_until_ready(out)

    assert out.shape == (B, T, 1), out.shape
    assert bool(jnp.all(jnp.isfinite(out)))
    print("KERNEL_OK")
</pallas_src>

<mosaic_0001>
module attributes {stable_mosaic.version = 11 : i64} {
  func.func @_mlp_kernel(%arg0: i32, %arg1: memref<8x128xf32, #tpu.memory_space<vmem>>, %arg2: memref<8x1xf32, #tpu.memory_space<vmem>>, %arg3: memref<8x1xf32, #tpu.memory_space<vmem>>, %arg4: memref<128x128xf32, #tpu.memory_space<vmem>>, %arg5: memref<1x128xf32, #tpu.memory_space<vmem>>, %arg6: memref<128x128xf32, #tpu.memory_space<vmem>>, %arg7: memref<1x128xf32, #tpu.memory_space<vmem>>, %arg8: memref<1x128xf32, #tpu.memory_space<vmem>>, %arg9: memref<1x128xf32, #tpu.memory_space<vmem>>, %arg10: memref<128x128xf32, #tpu.memory_space<vmem>>, %arg11: memref<1x128xf32, #tpu.memory_space<vmem>>, %arg12: memref<8x128xf32, #tpu.memory_space<vmem>>) attributes {dimension_semantics = [#tpu.dimension_semantics<parallel>], iteration_bounds = array<i64: 1>, scalar_prefetch = 0 : i64, scratch_operands = 0 : i64, tpu.core_type = #tpu.core_type<tc>, window_params = [{transform_indices = @transform_0, window_bounds = array<i64: 8, 128>}, {transform_indices = @transform_1, window_bounds = array<i64: 8, 1>}, {transform_indices = @transform_2, window_bounds = array<i64: 8, 1>}, {pipeline_mode = #tpu.pipeline_mode<synchronous>, transform_indices = @transform_3, window_bounds = array<i64: 128, 128>}, {pipeline_mode = #tpu.pipeline_mode<synchronous>, transform_indices = @transform_4, window_bounds = array<i64: 1, 128>}, {pipeline_mode = #tpu.pipeline_mode<synchronous>, transform_indices = @transform_5, window_bounds = array<i64: 128, 128>}, {pipeline_mode = #tpu.pipeline_mode<synchronous>, transform_indices = @transform_6, window_bounds = array<i64: 1, 128>}, {pipeline_mode = #tpu.pipeline_mode<synchronous>, transform_indices = @transform_7, window_bounds = array<i64: 1, 128>}, {pipeline_mode = #tpu.pipeline_mode<synchronous>, transform_indices = @transform_8, window_bounds = array<i64: 1, 128>}, {pipeline_mode = #tpu.pipeline_mode<synchronous>, transform_indices = @transform_9, window_bounds = array<i64: 128, 128>}, {pipeline_mode = #tpu.pipeline_mode<synchronous>, transform_indices = @transform_10, window_bounds = array<i64: 1, 128>}, {transform_indices = @transform_11, window_bounds = array<i64: 8, 128>}]} {
    %c0 = arith.constant 0 : index
    %c0_0 = arith.constant 0 : index
    %0 = vector.load %arg1[%c0, %c0_0] : memref<8x128xf32, #tpu.memory_space<vmem>>, vector<8x128xf32>
    %c0_1 = arith.constant 0 : index
    %c0_2 = arith.constant 0 : index
    %1 = vector.load %arg4[%c0_1, %c0_2] : memref<128x128xf32, #tpu.memory_space<vmem>>, vector<128x128xf32>
    %cst = arith.constant dense<0.000000e+00> : vector<8x128xf32>
    %2 = tpu.matmul %0, %1, %cst {dimension_numbers = #tpu.dot_dimension_numbers<[1], [0], [0], [1], [0, 0, 1, 1], [], []>} : vector<8x128xf32>, vector<128x128xf32>, vector<8x128xf32> -> vector<8x128xf32>
    %c0_3 = arith.constant 0 : index
    %c0_4 = arith.constant 0 : index
    %3 = vector.load %arg5[%c0_3, %c0_4] : memref<1x128xf32, #tpu.memory_space<vmem>>, vector<1x128xf32>
    %4 = vector.broadcast %3 : vector<1x128xf32> to vector<8x128xf32>
    %5 = arith.addf %2, %4 : vector<8x128xf32>
    %6 = math.tanh %5 : vector<8x128xf32>
    %c0_5 = arith.constant 0 : index
    %c0_6 = arith.constant 0 : index
    %7 = vector.load %arg6[%c0_5, %c0_6] : memref<128x128xf32, #tpu.memory_space<vmem>>, vector<128x128xf32>
    %cst_7 = arith.constant dense<0.000000e+00> : vector<8x128xf32>
    %8 = tpu.matmul %6, %7, %cst_7 {dimension_numbers = #tpu.dot_dimension_numbers<[1], [0], [0], [1], [0, 0, 1, 1], [], []>} : vector<8x128xf32>, vector<128x128xf32>, vector<8x128xf32> -> vector<8x128xf32>
    %c0_8 = arith.constant 0 : index
    %c0_9 = arith.constant 0 : index
    %9 = vector.load %arg2[%c0_8, %c0_9] : memref<8x1xf32, #tpu.memory_space<vmem>>, vector<8x1xf32>
    %c0_10 = arith.constant 0 : index
    %c0_11 = arith.constant 0 : index
    %10 = vector.load %arg7[%c0_10, %c0_11] : memref<1x128xf32, #tpu.memory_space<vmem>>, vector<1x128xf32>
    %11 = vector.broadcast %9 : vector<8x1xf32> to vector<8x128xf32>
    %12 = vector.broadcast %10 : vector<1x128xf32> to vector<8x128xf32>
    %13 = arith.mulf %11, %12 : vector<8x128xf32>
    %14 = arith.addf %8, %13 : vector<8x128xf32>
    %c0_12 = arith.constant 0 : index
    %c0_13 = arith.constant 0 : index
    %15 = vector.load %arg3[%c0_12, %c0_13] : memref<8x1xf32, #tpu.memory_space<vmem>>, vector<8x1xf32>
    %c0_14 = arith.constant 0 : index
    %c0_15 = arith.constant 0 : index
    %16 = vector.load %arg8[%c0_14, %c0_15] : memref<1x128xf32, #tpu.memory_space<vmem>>, vector<1x128xf32>
    %17 = vector.broadcast %15 : vector<8x1xf32> to vector<8x128xf32>
    %18 = vector.broadcast %16 : vector<1x128xf32> to vector<8x128xf32>
    %19 = arith.mulf %17, %18 : vector<8x128xf32>
    %20 = arith.addf %14, %19 : vector<8x128xf32>
    %c0_16 = arith.constant 0 : index
    %c0_17 = arith.constant 0 : index
    %21 = vector.load %arg9[%c0_16, %c0_17] : memref<1x128xf32, #tpu.memory_space<vmem>>, vector<1x128xf32>
    %22 = vector.broadcast %21 : vector<1x128xf32> to vector<8x128xf32>
    %23 = arith.addf %20, %22 : vector<8x128xf32>
    %24 = math.tanh %23 : vector<8x128xf32>
    %c0_18 = arith.constant 0 : index
    %c0_19 = arith.constant 0 : index
    %25 = vector.load %arg10[%c0_18, %c0_19] : memref<128x128xf32, #tpu.memory_space<vmem>>, vector<128x128xf32>
    %cst_20 = arith.constant dense<0.000000e+00> : vector<8x128xf32>
    %26 = tpu.matmul %24, %25, %cst_20 {dimension_numbers = #tpu.dot_dimension_numbers<[1], [0], [0], [1], [0, 0, 1, 1], [], []>} : vector<8x128xf32>, vector<128x128xf32>, vector<8x128xf32> -> vector<8x128xf32>
    %c0_21 = arith.constant 0 : index
    %c0_22 = arith.constant 0 : index
    %27 = vector.load %arg11[%c0_21, %c0_22] : memref<1x128xf32, #tpu.memory_space<vmem>>, vector<1x128xf32>
    %28 = vector.broadcast %27 : vector<1x128xf32> to vector<8x128xf32>
    %29 = arith.addf %26, %28 : vector<8x128xf32>
    %30 = tpu.iota {dimensions = array<i32: 1>} : vector<8x128xi32>
    %cst_23 = arith.constant 5.000000e-01 : f32
    %31 = vector.broadcast %cst_23 : f32 to vector<8x128xf32>
    %32 = arith.mulf %31, %29 : vector<8x128xf32>
    %33 = math.tanh %32 : vector<8x128xf32>
    %cst_24 = arith.constant 1.000000e+00 : f32
    %34 = vector.broadcast %cst_24 : f32 to vector<8x128xf32>
    %35 = arith.addf %33, %34 : vector<8x128xf32>
    %cst_25 = arith.constant 5.000000e-01 : f32
    %36 = vector.broadcast %cst_25 : f32 to vector<8x128xf32>
    %37 = arith.mulf %36, %35 : vector<8x128xf32>
    %cst_26 = arith.constant 1.600000e+04 : f32
    %38 = vector.broadcast %cst_26 : f32 to vector<8x128xf32>
    %39 = arith.mulf %37, %38 : vector<8x128xf32>
    %cst_27 = arith.constant 5.000000e-01 : f32
    %40 = vector.broadcast %cst_27 : f32 to vector<8x128xf32>
    %41 = arith.mulf %40, %29 : vector<8x128xf32>
    %42 = math.tanh %41 : vector<8x128xf32>
    %cst_28 = arith.constant 1.000000e+00 : f32
    %43 = vector.broadcast %cst_28 : f32 to vector<8x128xf32>
    %44 = arith.addf %42, %43 : vector<8x128xf32>
    %cst_29 = arith.constant 5.000000e-01 : f32
    %45 = vector.broadcast %cst_29 : f32 to vector<8x128xf32>
    %46 = arith.mulf %45, %44 : vector<8x128xf32>
    %47 = math.log %46 : vector<8x128xf32>
    %cst_30 = arith.constant 2.30258512 : f32
    %48 = vector.broadcast %cst_30 : f32 to vector<8x128xf32>
    %49 = arith.mulf %48, %47 : vector<8x128xf32>
    %50 = math.exp %49 : vector<8x128xf32>
    %cst_31 = arith.constant 2.000000e+00 : f32
    %51 = vector.broadcast %cst_31 : f32 to vector<8x128xf32>
    %52 = arith.mulf %51, %50 : vector<8x128xf32>
    %cst_32 = arith.constant 1.000000e-07 : f32
    %53 = vector.broadcast %cst_32 : f32 to vector<8x128xf32>
    %54 = arith.addf %52, %53 : vector<8x128xf32>
    %cst_33 = arith.constant 5.000000e+00 : f32
    %55 = vector.broadcast %cst_33 : f32 to vector<8x128xf32>
    %56 = arith.subf %29, %55 : vector<8x128xf32>
    %cst_34 = arith.constant 5.000000e-01 : f32
    %57 = vector.broadcast %cst_34 : f32 to vector<8x128xf32>
    %58 = arith.mulf %57, %56 : vector<8x128xf32>
    %59 = math.tanh %58 : vector<8x128xf32>
    %cst_35 = arith.constant 1.000000e+00 : f32
    %60 = vector.broadcast %cst_35 : f32 to vector<8x128xf32>
    %61 = arith.addf %59, %60 : vector<8x128xf32>
    %cst_36 = arith.constant 5.000000e-01 : f32
    %62 = vector.broadcast %cst_36 : f32 to vector<8x128xf32>
    %63 = arith.mulf %62, %61 : vector<8x128xf32>
    %64 = math.log %63 : vector<8x128xf32>
    %cst_37 = arith.constant 2.30258512 : f32
    %65 = vector.broadcast %cst_37 : f32 to vector<8x128xf32>
    %66 = arith.mulf %65, %64 : vector<8x128xf32>
    %67 = math.exp %66 : vector<8x128xf32>
    %cst_38 = arith.constant 2.000000e+00 : f32
    %68 = vector.broadcast %cst_38 : f32 to vector<8x128xf32>
    %69 = arith.mulf %68, %67 : vector<8x128xf32>
    %cst_39 = arith.constant 1.000000e-07 : f32
    %70 = vector.broadcast %cst_39 : f32 to vector<8x128xf32>
    %71 = arith.addf %69, %70 : vector<8x128xf32>
    %c8_i32 = arith.constant 8 : i32
    %72 = vector.broadcast %c8_i32 : i32 to vector<8x128xi32>
    %73 = arith.cmpi slt, %30, %72 : vector<8x128xi32>
    %c16_i32 = arith.constant 16 : i32
    %74 = vector.broadcast %c16_i32 : i32 to vector<8x128xi32>
    %75 = arith.cmpi sle, %30, %74 : vector<8x128xi32>
    %76 = arith.select %75, %54, %71 : vector<8x128xi1>, vector<8x128xf32>
    %77 = arith.select %73, %39, %76 : vector<8x128xi1>, vector<8x128xf32>
    %c0_40 = arith.constant 0 : index
    %c0_41 = arith.constant 0 : index
    %78 = vector.load %arg12[%c0_40, %c0_41] : memref<8x128xf32, #tpu.memory_space<vmem>>, vector<8x128xf32>
    tpu.vector_store %arg12[%c0_40, %c0_41], %77 {strides = array<i32>} : memref<8x128xf32, #tpu.memory_space<vmem>>, vector<8x128xf32>,
    return
  }
  func.func @transform_0(%arg0: i32) -> (i32, i32) {
    %c0_i32 = arith.constant 0 : i32
    %c0_i32_0 = arith.constant 0 : i32
    return %arg0, %c0_i32 : i32, i32
  }
  func.func @transform_1(%arg0: i32) -> (i32, i32) {
    %c0_i32 = arith.constant 0 : i32
    %c0_i32_0 = arith.constant 0 : i32
    return %arg0, %c0_i32 : i32, i32
  }
  func.func @transform_2(%arg0: i32) -> (i32, i32) {
    %c0_i32 = arith.constant 0 : i32
    %c0_i32_0 = arith.constant 0 : i32
    return %arg0, %c0_i32 : i32, i32
  }
  func.func @transform_3(%arg0: i32) -> (i32, i32) {
    %c0_i32 = arith.constant 0 : i32
    %c0_i32_0 = arith.constant 0 : i32
    %c0_i32_1 = arith.constant 0 : i32
    return %c0_i32, %c0_i32_0 : i32, i32
  }
  func.func @transform_4(%arg0: i32) -> (i32, i32) {
    %c0_i32 = arith.constant 0 : i32
    %c0_i32_0 = arith.constant 0 : i32
    %c0_i32_1 = arith.constant 0 : i32
    return %c0_i32, %c0_i32_0 : i32, i32
  }
  func.func @transform_5(%arg0: i32) -> (i32, i32) {
    %c0_i32 = arith.constant 0 : i32
    %c0_i32_0 = arith.constant 0 : i32
    %c0_i32_1 = arith.constant 0 : i32
    return %c0_i32, %c0_i32_0 : i32, i32
  }
  func.func @transform_6(%arg0: i32) -> (i32, i32) {
    %c0_i32 = arith.constant 0 : i32
    %c0_i32_0 = arith.constant 0 : i32
    %c0_i32_1 = arith.constant 0 : i32
    return %c0_i32, %c0_i32_0 : i32, i32
  }
  func.func @transform_7(%arg0: i32) -> (i32, i32) {
    %c0_i32 = arith.constant 0 : i32
    %c0_i32_0 = arith.constant 0 : i32
    %c0_i32_1 = arith.constant 0 : i32
    return %c0_i32, %c0_i32_0 : i32, i32
  }
  func.func @transform_8(%arg0: i32) -> (i32, i32) {
    %c0_i32 = arith.constant 0 : i32
    %c0_i32_0 = arith.constant 0 : i32
    %c0_i32_1 = arith.constant 0 : i32
    return %c0_i32, %c0_i32_0 : i32, i32
  }
  func.func @transform_9(%arg0: i32) -> (i32, i32) {
    %c0_i32 = arith.constant 0 : i32
    %c0_i32_0 = arith.constant 0 : i32
    %c0_i32_1 = arith.constant 0 : i32
    return %c0_i32, %c0_i32_0 : i32, i32
  }
  func.func @transform_10(%arg0: i32) -> (i32, i32) {
    %c0_i32 = arith.constant 0 : i32
    %c0_i32_0 = arith.constant 0 : i32
    %c0_i32_1 = arith.constant 0 : i32
    return %c0_i32, %c0_i32_0 : i32, i32
  }
  func.func @transform_11(%arg0: i32) -> (i32, i32) {
    %c0_i32 = arith.constant 0 : i32
    %c0_i32_0 = arith.constant 0 : i32
    return %arg0, %c0_i32 : i32, i32
  }
}

</mosaic_0001>

<bundles_post_ra>
// kernel: tpu_custom_call.1
= control target key start
LH: loop header
LB: loop body
LE: loop exit
PB: predicated region body
PF: predicated region fallthrough
CT: control target
= control target key end

     0   :  { %16 = vsyncpa [#allocation3], 0  ;;  %s872_s0 = inlined_call_operand.vmem [shape: f32[8,128], index: 0, kind: input, shape index: {}]   ;;  %s873_s1 = inlined_call_operand.vmem [shape: f32[8,1], index: 1, kind: input, shape index: {}]   ;;  %s874_s2 = inlined_call_operand.vmem [shape: f32[8,1], index: 2, kind: input, shape index: {}]   ;;  %s875_s3 = inlined_call_operand.hbm [shape: f32[128,128], index: 3, kind: input, shape index: {}]   ;;  %s876_s4 = inlined_call_operand.vmem [shape: f32[1,128], index: 4, kind: input, shape index: {}]   ;;  %s877_s5 = inlined_call_operand.hbm [shape: f32[128,128], index: 5, kind: input, shape index: {}]   ;;  %s878_s6 = inlined_call_operand.vmem [shape: f32[1,128], index: 6, kind: input, shape index: {}]   ;;  %s879_s7 = inlined_call_operand.vmem [shape: f32[1,128], index: 7, kind: input, shape index: {}]   ;;  %s880_s8 = inlined_call_operand.vmem [shape: f32[1,128], index: 8, kind: input, shape index: {}]   ;;  %s881_s9 = inlined_call_operand.hbm [shape: f32[128,128], index: 9, kind: input, shape index: {}]   ;;  %s882_s10 = inlined_call_operand.vmem [shape: f32[1,128], index: 10, kind: input, shape index: {}]   ;;  %s883_s11 = inlined_call_operand.hbm [shape: f32[8,128], index: 11, kind: output, shape index: {}]  }
   0x1   :  { %17 = vsyncpa [#allocation6], 0 }
   0x2   :  { %18 = vsyncpa [#allocation4], 0  ;;  %s713_s17 = smov [#allocation5]   ;;  %s714_s19 = smov [#allocation2]  }
   0x3   :  { %s44_s18 = sshll.u32 %s713_s17, 4  ;;  %s30_s20 = sshll.u32 %s714_s19, 4  ;;  %s45_s18 = int_to_ptr.vmem [resolvable:$true] %s44_s18  ;;  %s31_s20 = int_to_ptr.vmem [resolvable:$true] %s30_s20 }
   0x4   :  { %s635_s21 = scalar_lea.vmem %s45_s18, 2048  ;;  %p640_p1 = scmp.lt.s32.totalorder %s45_s18, %s45_s18 }
   0x5   :  { %p636_p0 = scmp.ne.s32.totalorder %s45_s18, %s635_s21  ;;  %p641_p2 = scmp.lt.s32.totalorder %s635_s21, %s635_s21 }
   0x7   :  { %p642_p3 = por %p641_p2, %p640_p1 }
   0x9   :  { %p643_p4 = pnand %p642_p3, %p636_p0 }
   0xb   :  { %646 = shalt.err (!%p643_p4)
}
   0xc   :  { %s715_s22 = smov 128   ;;  %s716_s23 = smov 8  }
   0xd   :  { %50 = dma.hbm_to_vmem [thread:$0]  %s877_s5, 2048, %s45_s18, [#allocation6], %s715_s22, %s715_s22, %s716_s23  }
   0xe   :  { %s655_s26 = scalar_lea.vmem %s31_s20, 2048  ;;  %p660_p6 = scmp.lt.s32.totalorder %s31_s20, %s31_s20 }
   0xf   :  { %p656_p5 = scmp.ne.s32.totalorder %s31_s20, %s655_s26  ;;  %p661_p7 = scmp.lt.s32.totalorder %s655_s26, %s655_s26 }
  0x11   :  { %p662_p8 = por %p661_p7, %p660_p6 }
  0x13   :  { %p663_p9 = pnand %p662_p8, %p656_p5 }
  0x15   :  { %666 = shalt.err (!%p663_p9)
}
  0x16   :  { %36 = dma.hbm_to_vmem [thread:$0]  %s875_s3, 2048, %s31_s20, [#allocation3], %s715_s22, %s715_s22, %s716_s23  }
  0x17   :  { %s717_s29 = smov [#allocation7]  }
  0x18   :  { %s62_s30 = sshll.u32 %s717_s29, 4  ;;  %s63_s30 = int_to_ptr.vmem [resolvable:$true] %s62_s30 }
  0x19   :  { %s675_s12 = scalar_lea.vmem %s63_s30, 2048  ;;  %p680_p11 = scmp.lt.s32.totalorder %s63_s30, %s63_s30 }
  0x1a   :  { %p676_p10 = scmp.ne.s32.totalorder %s63_s30, %s675_s12  ;;  %p681_p12 = scmp.lt.s32.totalorder %s675_s12, %s675_s12 }
  0x1c   :  { %p682_p13 = por %p681_p12, %p680_p11 }
  0x1e   :  { %p683_p0 = pnand %p682_p13, %p676_p10 }
  0x20   :  { %686 = shalt.err (!%p683_p0)
}
  0x21   :  { %68 = dma.hbm_to_vmem [thread:$0]  %s881_s9, 2048, %s63_s30, [#allocation6], %s715_s22, %s715_s22, %s716_s23  }
  0x22   :  { %707 = dma.done.wait [#allocation3], 2048  }
  0x23   :  { %708 = vsyncadd [#allocation3], 4294965248 }
  0x24   :  { %709 = dma.done.wait [#allocation6], 4096  }
  0x25   :  { %710 = vsyncadd [#allocation6], 4294963200  ;;  %v718_v0 = vmov 0.0   ;;  %vm719_vm0 = vmmov 0   ;;  %v96_v1 = vld [vmem:[#allocation2 + $0x78] sm:$0xff]  ;;  %v95_v2 = vld [vmem:[#allocation2 + $0x70] sm:$0xff] }
  0x26   :  { %496 = vmatprep.subr.mxu0 %v718_v0  ;;  %528 = vmatprep.mubr.msk.f32.mxu0 %vm719_vm0, %v718_v0  ;;  %v94_v3 = vld [vmem:[#allocation2 + $0x68] sm:$0xff]  ;;  %v93_v4 = vld [vmem:[#allocation2 + $0x60] sm:$0xff]  ;;  %v190_v5 = vld [vmem:[#allocation5 + $0x78] sm:$0xff]  ;;  %v720_v36 = vmov 0  }
  0x27   :  { %531 = vmatprep.subr.mxu1 %v718_v0  ;;  %563 = vmatprep.mubr.msk.f32.mxu1 %vm719_vm0, %v718_v0  ;;  %v92_v6 = vld [vmem:[#allocation2 + $0x58] sm:$0xff]  ;;  %v189_v7 = vld [vmem:[#allocation5 + $0x70] sm:$0xff]  ;;  %v188_v8 = vld [vmem:[#allocation5 + $0x68] sm:$0xff] }
  0x28   :  { %497 = vmatpush3.msra.mxu0 %v96_v1  ;;  %532 = vmatpush3.msra.mxu1 %v190_v5  ;;  %v91_v9 = vld [vmem:[#allocation2 + $0x50] sm:$0xff]  ;;  %v187_v10 = vld [vmem:[#allocation5 + $0x60] sm:$0xff]  ;;  %v90_v11 = vld [vmem:[#allocation2 + $0x48] sm:$0xff] }
  0x29   :  { %498 = vmatprep.subr.mxu0 %v718_v0  ;;  %533 = vmatprep.subr.mxu1 %v718_v0  ;;  %v186_v12 = vld [vmem:[#allocation5 + $0x58] sm:$0xff]  ;;  %v89_v13 = vld [vmem:[#allocation2 + $0x40] sm:$0xff]  ;;  %v185_v14 = vld [vmem:[#allocation5 + $0x50] sm:$0xff] }
  0x2a   :  { %499 = vmatpush3.msra.mxu0 %v95_v2  ;;  %534 = vmatpush3.msra.mxu1 %v189_v7  ;;  %v88_v15 = vld [vmem:[#allocation2 + $0x38] sm:$0xff]  ;;  %v184_v16 = vld [vmem:[#allocation5 + $0x48] sm:$0xff]  ;;  %v87_v17 = vld [vmem:[#allocation2 + $0x30] sm:$0xff] }
  0x2b   :  { %500 = vmatprep.subr.mxu0 %v718_v0  ;;  %535 = vmatprep.subr.mxu1 %v718_v0  ;;  %v86_v18 = vld [vmem:[#allocation2 + $0x28] sm:$0xff]  ;;  %v85_v19 = vld [vmem:[#allocation2 + $0x20] sm:$0xff]  ;;  %v84_v20 = vld [vmem:[#allocation2 + $0x18] sm:$0xff] }
  0x2c   :  { %501 = vmatpush3.msra.mxu0 %v94_v3  ;;  %536 = vmatpush3.msra.mxu1 %v188_v8  ;;  %v83_v21 = vld [vmem:[#allocation2 + $0x10] sm:$0xff]  ;;  %v82_v22 = vld [vmem:[#allocation2 + $0x8] sm:$0xff]  ;;  %v81_v23 = vld [vmem:[#allocation2] sm:$0xff] }
  0x2d   :  { %502 = vmatprep.subr.mxu0 %v718_v0  ;;  %537 = vmatprep.subr.mxu1 %v718_v0  ;;  %v80_v24 = vld [vmem:[%s872_s0] sm:$0xff]  ;;  %v182_v26 = vld [vmem:[#allocation5 + $0x38] sm:$0xff]  ;;  %v181_v27 = vld [vmem:[#allocation5 + $0x30] sm:$0xff] }
  0x2e   :  { %503 = vmatpush3.msra.mxu0 %v93_v4  ;;  %538 = vmatpush3.msra.mxu1 %v187_v10  ;;  %v183_v25 = vld [vmem:[#allocation5 + $0x40] sm:$0xff]  ;;  %v180_v28 = vld [vmem:[#allocation5 + $0x28] sm:$0xff]  ;;  %v178_v30 = vld [vmem:[#allocation5 + $0x18] sm:$0xff] }
  0x2f   :  { %504 = vmatprep.subr.mxu0 %v718_v0  ;;  %539 = vmatprep.subr.mxu1 %v718_v0  ;;  %v179_v29 = vld [vmem:[#allocation5 + $0x20] sm:$0xff]  ;;  %v177_v31 = vld [vmem:[#allocation5 + $0x10] sm:$0xff]  ;;  %v176_v32 = vld [vmem:[#allocation5 + $0x8] sm:$0xff] }
  0x30   :  { %505 = vmatpush3.msra.mxu0 %v92_v6  ;;  %540 = vmatpush3.msra.mxu1 %v186_v12  ;;  %v175_v33 = vld [vmem:[#allocation5] sm:$0xff]  ;;  %v314_v35 = vld [vmem:[#allocation7 + $0x78] sm:$0xff]  ;;  %v313_v37 = vld [vmem:[#allocation7 + $0x70] sm:$0xff] }
  0x31   :  { %506 = vmatprep.subr.mxu0 %v718_v0  ;;  %541 = vmatprep.subr.mxu1 %v718_v0  ;;  %v191_v34 = vld [vmem:[%s873_s1] sm:$0xff]  ;;  %v312_v38 = vld [vmem:[#allocation7 + $0x68] sm:$0xff]  ;;  %v310_v41 = vld [vmem:[#allocation7 + $0x58] sm:$0xff] }
  0x32   :  { %507 = vmatpush3.msra.mxu0 %v91_v9  ;;  %542 = vmatpush3.msra.mxu1 %v185_v14  ;;  %v275_v39 = vld [vmem:[%s874_s2] sm:$0xff]  ;;  %v309_v47 = vld [vmem:[#allocation7 + $0x50] sm:$0xff]  ;;  %v308_v48 = vld [vmem:[#allocation7 + $0x48] sm:$0xff] }
  0x33   :  { %508 = vmatprep.subr.mxu0 %v718_v0  ;;  %543 = vmatprep.subr.mxu1 %v718_v0  ;;  %v311_v40 = vld [vmem:[#allocation7 + $0x60] sm:$0xff]  ;;  %v306_v50 = vld [vmem:[#allocation7 + $0x38] sm:$0xff]  ;;  %v305_v51 = vld [vmem:[#allocation7 + $0x30] sm:$0xff] }
  0x34   :  { %509 = vmatpush3.msra.mxu0 %v90_v11  ;;  %544 = vmatpush3.msra.mxu1 %v184_v16  ;;  %v439_v42 = vld [vmem:[%s876_s4] ss:$0 sm:$0xff]  ;;  %v304_v52 = vld [vmem:[#allocation7 + $0x28] sm:$0xff]  ;;  %v302_v54 = vld [vmem:[#allocation7 + $0x18] sm:$0xff] }
  0x35   :  { %510 = vmatprep.subr.mxu0 %v718_v0  ;;  %545 = vmatprep.subr.mxu1 %v718_v0  ;;  %v307_v49 = vld [vmem:[#allocation7 + $0x40] sm:$0xff]  ;;  %v301_v55 = vld [vmem:[#allocation7 + $0x10] sm:$0xff]  ;;  %v300_v56 = vld [vmem:[#allocation7 + $0x8] sm:$0xff] }
  0x36   :  { %511 = vmatpush3.msra.mxu0 %v89_v13  ;;  %546 = vmatpush3.msra.mxu1 %v183_v25  ;;  %v303_v53 = vld [vmem:[#allocation7 + $0x20] sm:$0xff] }
  0x37   :  { %512 = vmatprep.subr.mxu0 %v718_v0  ;;  %547 = vmatprep.subr.mxu1 %v718_v0  ;;  %v299_v57 = vld [vmem:[#allocation7] sm:$0xff] }
  0x38   :  { %513 = vmatpush3.msra.mxu0 %v88_v15  ;;  %548 = vmatpush3.msra.mxu1 %v182_v26  ;;  %v440_v59 = vld [vmem:[%s878_s6] ss:$0 sm:$0xff] }
  0x39   :  { %514 = vmatprep.subr.mxu0 %v718_v0  ;;  %549 = vmatprep.subr.mxu1 %v718_v0  ;;  %v441_v60 = vld [vmem:[%s879_s7] ss:$0 sm:$0xff]  ;;  %s721_s7 = smov [#allocation8]  }
  0x3a   :  { %515 = vmatpush3.msra.mxu0 %v87_v17  ;;  %550 = vmatpush3.msra.mxu1 %v181_v27  ;;  %v442_v3 = vld [vmem:[%s880_s8] ss:$0 sm:$0xff]  ;;  %s429_s8 = sshll.u32 %s721_s7, 4  ;;  %s430_s8 = int_to_ptr.vmem [resolvable:$true] %s429_s8 }
  0x3b   :  { %516 = vmatprep.subr.mxu0 %v718_v0  ;;  %551 = vmatprep.subr.mxu1 %v718_v0  ;;  %v443_v7 = vld [vmem:[%s882_s10] ss:$0 sm:$0xff]  ;;  %s687_s10 = scalar_lea.vmem %s430_s8, 128  ;;  %p692_p2 = scmp.lt.s32.totalorder %s430_s8, %s430_s8 }
  0x3c   :  { %517 = vmatpush3.msra.mxu0 %v86_v18  ;;  %552 = vmatpush3.msra.mxu1 %v180_v28  ;;  %v392_v28 = vlaneseq  ;;  %p688_p1 = scmp.ne.s32.totalorder %s430_s8, %s687_s10  ;;  %p693_p3 = scmp.lt.s32.totalorder %s687_s10, %s687_s10 }
  0x3d   :  { %518 = vmatprep.subr.mxu0 %v718_v0  ;;  %553 = vmatprep.subr.mxu1 %v718_v0 }
  0x3e   :  { %519 = vmatpush3.msra.mxu0 %v85_v19  ;;  %554 = vmatpush3.msra.mxu1 %v179_v29  ;;  %p694_p4 = por %p693_p3, %p692_p2 }
  0x3f   :  { %520 = vmatprep.subr.mxu0 %v718_v0  ;;  %555 = vmatprep.subr.mxu1 %v718_v0 }
  0x40   :  { %521 = vmatpush3.msra.mxu0 %v84_v20  ;;  %556 = vmatpush3.msra.mxu1 %v178_v30  ;;  %v393_v30 = vand.u32 127, %v392_v28  ;;  %p695_p5 = pnand %p694_p4, %p688_p1 }
  0x41   :  { %522 = vmatprep.subr.mxu0 %v718_v0  ;;  %557 = vmatprep.subr.mxu1 %v718_v0 }
  0x42   :  { %523 = vmatpush3.msra.mxu0 %v83_v21  ;;  %558 = vmatpush3.msra.mxu1 %v177_v31  ;;  %vm419_vm1 = vcmp.le.s32.totalorder %v393_v30, 16  ;;  %vm418_vm2 = vcmp.lt.s32.totalorder %v393_v30, 8 }
  0x43   :  { %524 = vmatprep.subr.mxu0 %v718_v0  ;;  %559 = vmatprep.subr.mxu1 %v718_v0 }
  0x44   :  { %525 = vmatpush3.msra.mxu0 %v82_v22  ;;  %560 = vmatpush3.msra.mxu1 %v176_v32 }
  0x45   :  { %526 = vmatprep.subr.mxu0 %v718_v0  ;;  %561 = vmatprep.subr.mxu1 %v718_v0 }
  0x46   :  { %527 = vmatpush3.msra.mxu0 %v81_v23  ;;  %562 = vmatpush3.msra.mxu1 %v175_v33 }
  0x47   :  { %529 = vmatmul.mubr.f32.vlgmr.msra.gmra.mxu0 %v80_v24  ;;  %566 = vmatprep.subr.mxu0 %v718_v0 }
  0x48   :  { %598 = vmatprep.mubr.msk.f32.mxu0 %vm719_vm0, %v718_v0  ;;  %610 = vset.pattern.permute.xlu0 %v720_v36 }
  0x49   :  { %567 = vmatpush3.msra.mxu0 %v314_v35  ;;  %195 = vperm.xlu0 %610, %v191_v34  }
  0x4a   :  { %568 = vmatprep.subr.mxu0 %v718_v0 }
  0x4b   :  { %569 = vmatpush3.msra.mxu0 %v313_v37 }
  0x4c   :  { %570 = vmatprep.subr.mxu0 %v718_v0 }
  0x4d   :  { %571 = vmatpush3.msra.mxu0 %v312_v38  ;;  %279 = vperm.xlu0 %610, %v275_v39  }
  0x4e   :  { %572 = vmatprep.subr.mxu0 %v718_v0 }
  0x4f   :  { %573 = vmatpush3.msra.mxu0 %v311_v40 }
  0x50   :  { %574 = vmatprep.subr.mxu0 %v718_v0 }
  0x51   :  { %575 = vmatpush3.msra.mxu0 %v310_v41 }
  0x52   :  { %576 = vmatprep.subr.mxu0 %v718_v0 }
  0x53   :  { %577 = vmatpush3.msra.mxu0 %v309_v47 }
  0x54   :  { %578 = vmatprep.subr.mxu0 %v718_v0 }
  0x55   :  { %579 = vmatpush3.msra.mxu0 %v308_v48 }
  0x56   :  { %580 = vmatprep.subr.mxu0 %v718_v0 }
  0x57   :  { %581 = vmatpush3.msra.mxu0 %v307_v49 }
  0x58   :  { %582 = vmatprep.subr.mxu0 %v718_v0 }
  0x59   :  { %583 = vmatpush3.msra.mxu0 %v306_v50 }
  0x5a   :  { %584 = vmatprep.subr.mxu0 %v718_v0 }
  0x5b   :  { %585 = vmatpush3.msra.mxu0 %v305_v51 }
  0x5c   :  { %586 = vmatprep.subr.mxu0 %v718_v0 }
  0x5d   :  { %587 = vmatpush3.msra.mxu0 %v304_v52 }
  0x5e   :  { %588 = vmatprep.subr.mxu0 %v718_v0 }
  0x5f   :  { %589 = vmatpush3.msra.mxu0 %v303_v53 }
  0x60   :  { %590 = vmatprep.subr.mxu0 %v718_v0 }
  0x61   :  { %591 = vmatpush3.msra.mxu0 %v302_v54 }
  0x62   :  { %592 = vmatprep.subr.mxu0 %v718_v0 }
  0x63   :  { %593 = vmatpush3.msra.mxu0 %v301_v55 }
  0x64   :  { %594 = vmatprep.subr.mxu0 %v718_v0 }
  0x65   :  { %595 = vmatpush3.msra.mxu0 %v300_v56 }
  0x66   :  { %596 = vmatprep.subr.mxu0 %v718_v0 }
  0x67   :  { %597 = vmatpush3.msra.mxu0 %v299_v57 }
  0xc4   :  { %v196_v58 = vpop.permute.xlu0 %195 }
  0xc5   :  { %v204_v62 = vmul.f32 %v440_v59, %v196_v58 }
  0xc8   :  { %v280_v61 = vpop.permute.xlu0 %279 }
  0xc9   :  { %v288_v1 = vmul.f32 %v441_v60, %v280_v61 }
 0x107   :  { %v170_v43 = vpop.f32.mrf.mxu0 }
 0x108   :  { %v171_v44 = vadd.f32 %v439_v42, %v170_v43 }
 0x109   :  { %v530_v45 = vpop.f32.mrf.mxu0 }
 0x10a   :  { %611 = vtanh.f32 %v171_v44 }
 0x117   :  { %v612_v46 = vpop.eup %611 }
 0x118   :  { %564 = vmatmul.mubr.f32.vlgmr.msra.gmra.mxu1 %v612_v46 }
 0x1d8   :  { %v271_v63 = vpop.f32.mrf.mxu1 }
 0x1d9   :  { %v272_v2 = vadd.f32 %v271_v63, %v204_v62 }
 0x1da   :  { %v565_v0 = vpop.f32.mrf.mxu1 }
 0x1db   :  { %v289_v4 = vadd.f32 %v288_v1, %v272_v2 }
 0x1dd   :  { %v297_v5 = vadd.f32 %v442_v3, %v289_v4 }
 0x1df   :  { %613 = vtanh.f32 %v297_v5 }
 0x1ec   :  { %v614_v6 = vpop.eup %613 }
 0x1ed   :  { %599 = vmatmul.mubr.f32.vlgmr.msra.gmra.mxu0 %v614_v6 }
 0x2ad   :  { %v388_v8 = vpop.f32.mrf.mxu0 }
 0x2ae   :  { %v389_v9 = vadd.f32 %v443_v7, %v388_v8 }
 0x2af   :  { %v600_v10 = vpop.f32.mrf.mxu0 }
 0x2b0   :  { %v394_v11 = vmul.f32 0.5, %v389_v9  ;;  %v444_v12 = vadd.f32 -5.0, %v389_v9 }
 0x2b2   :  { %615 = vtanh.f32 %v394_v11  ;;  %v407_v13 = vmul.f32 0.5, %v444_v12 }
 0x2b4   :  { %617 = vtanh.f32 %v407_v13 }
 0x2bf   :  { %v616_v14 = vpop.eup %615 }
 0x2c0   :  { %v396_v15 = vadd.f32 1.0, %v616_v14 }
 0x2c1   :  { %v618_v16 = vpop.eup %617 }
 0x2c2   :  { %v397_v17 = vmul.f32 0.5, %v396_v15  ;;  %v409_v18 = vadd.f32 1.0, %v618_v16 }
 0x2c4   :  { %619 = vlog2.f32 %v397_v17  ;;  %v410_v19 = vmul.f32 0.5, %v409_v18  ;;  %v398_v36 = vmul.f32 16000.0, %v397_v17 }
 0x2c6   :  { %621 = vlog2.f32 %v410_v19 }
 0x2d1   :  { %v620_v20 = vpop.eup %619 }
 0x2d2   :  { %v400_v21 = vmul.f32 0.6931472, %v620_v20 }
 0x2d3   :  { %v622_v22 = vpop.eup %621 }
 0x2d4   :  { %v401_v23 = vmul.f32 2.3025851, %v400_v21  ;;  %v412_v24 = vmul.f32 0.6931472, %v622_v22 }
 0x2d6   :  { %v402_v25 = vmul.f32 1.442695, %v401_v23  ;;  %v413_v26 = vmul.f32 2.3025851, %v412_v24 }
 0x2d8   :  { %v414_v27 = vmul.f32 1.442695, %v413_v26  ;;  %623 = vpow2.f32 %v402_v25 }
 0x2da   :  { %625 = vpow2.f32 %v414_v27 }
 0x2e5   :  { %v624_v29 = vpop.eup %623 }
 0x2e6   :  { %v404_v31 = vmul.f32 2.0, %v624_v29 }
 0x2e7   :  { %v626_v32 = vpop.eup %625 }
 0x2e8   :  { %v416_v33 = vmul.f32 2.0, %v626_v32  ;;  %v405_v34 = vadd.f32 1e-07, %v404_v31 }
 0x2ea   :  { %v417_v35 = vadd.f32 1e-07, %v416_v33 }
 0x2ec   :  { %v420_v37 = vsel %vm419_vm1, %v405_v34, %v417_v35 }
 0x2ed   :  { %v421_v38 = vsel %vm418_vm2, %v398_v36, %v420_v37 }
 0x2ee   :  { %422 = vst [vmem:[#allocation8] sm:$0xff] %v421_v38 }
 0x2ef   :  { %698 = shalt.err (!%p695_p5)
}
 0x2f0   :  { %432 = dma.vmem_to_hbm [thread:$0]  %s430_s8, 128, %s883_s11, [#allocation4]  }
 0x2f1   :  { %711 = dma.done.wait [#allocation4], 128  }
 0x2f2   :  { %712 = vsyncadd [#allocation4], 4294967168 }
 0x2f3   :  { %436 = vsyncpa [#allocation3], 1 }
 0x2f4   :  { %437 = vsyncpa [#allocation6], 1 }
 0x2f5   :  { %438 = vsyncpa [#allocation4], 1 }

</bundles_post_ra>
